<compile_context>
chip_gen: v7x
topology: tpu7x:2x2x1
jax: 0.10.0
libtpu: 0.0.40
codegen_flags: <defaults>
</compile_context>

<pallas_src>
import functools

import jax
import jax.numpy as jnp
from jax.experimental import pallas as pl
from jax.experimental.pallas import tpu as pltpu

C_PAD = 128          # lane-dense padded width for all feature/class dims
STREAM_TILE_M = 512  # A row tile (streaming path)


# --------------------------------------------------------------------------- #
# shared in-kernel helpers
# --------------------------------------------------------------------------- #
def _masked_log_softmax(z, num_classes):
    """log_softmax over the first `num_classes` lanes; padded lanes masked out."""
    col = jax.lax.broadcasted_iota(jnp.int32, z.shape, 1)
    z = jnp.where(col < num_classes, z, jnp.float32(-1e30))
    m = jnp.max(z, axis=1, keepdims=True)
    s = z - m
    lse = jnp.log(jnp.sum(jnp.exp(s), axis=1, keepdims=True))
    return s - lse


# --------------------------------------------------------------------------- #
# fused kernel (small graphs): everything VMEM-resident, single launch
# --------------------------------------------------------------------------- #
def gcn_fused_kernel(a_ref, x_ref, w1_ref, b1_ref, w2_ref, b2_ref, o_ref, *,
                     num_classes):
    a = a_ref[...]
    # layer 1: H = relu((A @ X) @ W1 + b1); F.dropout(eval) is the identity.
    ax = jnp.dot(a, x_ref[...], preferred_element_type=jnp.float32)
    h = jnp.dot(ax.astype(jnp.bfloat16), w1_ref[...],
                preferred_element_type=jnp.float32)
    h = jnp.maximum(h + b1_ref[...], 0.0).astype(jnp.bfloat16)
    # layer 2: log_softmax((A @ H) @ W2 + b2)  (H never leaves VMEM)
    ah = jnp.dot(a, h, preferred_element_type=jnp.float32)
    z = jnp.dot(ah.astype(jnp.bfloat16), w2_ref[...],
                preferred_element_type=jnp.float32) + b2_ref[...]
    o_ref[...] = _masked_log_softmax(z, num_classes)


# --------------------------------------------------------------------------- #
# streaming kernels (large graphs): rectangular A tiles, resident X / H
# --------------------------------------------------------------------------- #
def _accumulate_a_feat(a_ref, feat_ref, acc_ref, tile_k):
    """acc[row tile] += A[row tile, k tile] @ feat[k tile]; feat fully resident."""
    k = pl.program_id(1)

    @pl.when(k == 0)
    def _init():
        acc_ref[...] = jnp.zeros_like(acc_ref)

    k0 = pl.multiple_of(k * tile_k, tile_k)
    acc_ref[...] += jnp.dot(a_ref[...], feat_ref[pl.ds(k0, tile_k), :],
                            preferred_element_type=jnp.float32)


def gcn_layer1_stream_kernel(a_ref, x_ref, w1_ref, b1_ref, h_ref, acc_ref, *,
                             tile_k):
    """H[row tile] = relu((A @ X) @ W1 + b1), reduction over A's column tiles."""
    _accumulate_a_feat(a_ref, x_ref, acc_ref, tile_k)

    @pl.when(pl.program_id(1) == pl.num_programs(1) - 1)
    def _finalize():
        ax = acc_ref[...].astype(jnp.bfloat16)
        h = jnp.dot(ax, w1_ref[...], preferred_element_type=jnp.float32)
        # F.dropout(training=False) is the identity (module benchmarked in eval).
        h_ref[...] = jnp.maximum(h + b1_ref[...], 0.0).astype(h_ref.dtype)


def gcn_layer2_stream_kernel(a_ref, h_ref, w2_ref, b2_ref, o_ref, acc_ref, *,
                             tile_k, num_classes):
    """log_softmax((A @ H) @ W2 + b2) with padded class lanes masked out."""
    _accumulate_a_feat(a_ref, h_ref, acc_ref, tile_k)

    @pl.when(pl.program_id(1) == pl.num_programs(1) - 1)
    def _finalize():
        ah = acc_ref[...].astype(jnp.bfloat16)
        z = jnp.dot(ah, w2_ref[...], preferred_element_type=jnp.float32)
        o_ref[...] = _masked_log_softmax(z + b2_ref[...], num_classes)


# --------------------------------------------------------------------------- #
# host-side helpers
# --------------------------------------------------------------------------- #
def gcn_norm_adj(edge_index, num_nodes):
    """Dense D^{-1/2}(A+I)D^{-1/2} from a (2, E) edge_index (src, dst).

    Note: duplicate edges collapse to weight 1 (`.set`); PyG sums edge weights
    for multigraphs, which would differ.
    """
    src, dst = edge_index[0], edge_index[1]
    adj = jnp.zeros((num_nodes, num_nodes), jnp.float32)
    adj = adj.at[dst, src].set(1.0)          # message flows src -> dst
    adj = adj + jnp.eye(num_nodes, dtype=jnp.float32)
    deg = jnp.sum(adj, axis=1)
    d_inv_sqrt = 1.0 / jnp.sqrt(deg)
    return adj * d_inv_sqrt[:, None] * d_inv_sqrt[None, :]


def _round_up(x, m):
    return (x + m - 1) // m * m


def _pad_to(x, shape):
    return jnp.pad(x, [(0, s - d) for d, s in zip(x.shape, shape)])


def _vmem_capacity_bytes():
    """Physical VMEM of the current generation (128 MiB v5e/v6e, 64 MiB v7x)."""
    try:
        cap = getattr(pltpu.get_tpu_info(), "vmem_capacity_bytes", None)
        if cap:
            return int(cap)
    except Exception:
        pass
    return 64 * 1024 * 1024  # conservative (v7x-sized) fallback


def _default_max_resident_nodes(vmem_cap_bytes):
    # Keep bf16 A_hat (2 * n^2 bytes) to ~1/3 of physical VMEM so the fused kernel
    # leaves room for X / H / output / compiler scratch:
    # ~4.6K nodes on v5e/v6e (128 MiB), ~3.3K on v7x (64 MiB).
    budget = vmem_cap_bytes // 3
    return int((budget // 2) ** 0.5)


def _pad_params(params):
    w1, b1, w2, b2 = params
    return (
        _pad_to(w1, (C_PAD, C_PAD)).astype(jnp.bfloat16),
        _pad_to(b1.reshape(1, -1), (1, C_PAD)).astype(jnp.float32),
        _pad_to(w2, (C_PAD, C_PAD)).astype(jnp.bfloat16),
        _pad_to(b2.reshape(1, -1), (1, C_PAD)).astype(jnp.float32),
    )


# --------------------------------------------------------------------------- #
# forward paths
# --------------------------------------------------------------------------- #
def _forward_fused(x, a_hat, params, n, n_pad, cout, vmem_limit):
    w1_p, b1_p, w2_p, b2_p = _pad_params(params)
    a_p = _pad_to(a_hat, (n_pad, n_pad)).astype(jnp.bfloat16)
    x_p = _pad_to(x, (n_pad, C_PAD)).astype(jnp.bfloat16)

    out_p = pl.pallas_call(
        functools.partial(gcn_fused_kernel, num_classes=cout),
        out_shape=jax.ShapeDtypeStruct((n_pad, C_PAD), jnp.float32),
        compiler_params=pltpu.CompilerParams(vmem_limit_bytes=vmem_limit),
        cost_estimate=pl.CostEstimate(
            flops=2 * (2 * n_pad * n_pad * C_PAD + 2 * n_pad * C_PAD * C_PAD),
            transcendentals=n_pad * C_PAD,
            bytes_accessed=2 * n_pad * n_pad                 # A_hat (bf16), read once
            + 2 * n_pad * C_PAD                              # X (bf16)
            + 2 * (2 * C_PAD * C_PAD) + 2 * (4 * C_PAD)      # W1/W2 + b1/b2
            + 4 * n_pad * C_PAD,                             # output (f32)
        ),
    )(a_p, x_p, w1_p, b1_p, w2_p, b2_p)

    return out_p[:n, :cout]


def _forward_streaming(x, a_hat, params, n, cout, vmem_limit):
    w1_p, b1_p, w2_p, b2_p = _pad_params(params)

    # Always pad to a multiple of 1024: big rectangular tiles always apply (no
    # 128-tile fallback) and the row-tile count is even for v7x's two TensorCores.
    n_pad = _round_up(max(n, 1024), 1024)
    tile_m = STREAM_TILE_M
    tile_k = 2048 if n_pad % 2048 == 0 else 1024

    a_p = _pad_to(a_hat, (n_pad, n_pad)).astype(jnp.bfloat16)
    x_p = _pad_to(x, (n_pad, C_PAD)).astype(jnp.bfloat16)

    grid = (n_pad // tile_m, n_pad // tile_k)   # (row tiles, reduction tiles) — reduction last
    cparams = pltpu.CompilerParams(
        dimension_semantics=("parallel", "arbitrary"),
        vmem_limit_bytes=vmem_limit,
    )

    # A: rectangular block, wide on the reduction axis (long sequential DMAs).
    a_spec = pl.BlockSpec((tile_m, tile_k), lambda i, k: (i, k))
    # X / H: ONE grid-invariant full-height block, k-sliced inside the kernel
    # (removes the per-row-tile re-streaming of the feature matrix).
    feat_spec = pl.BlockSpec((n_pad, C_PAD), lambda i, k: (0, 0))
    w_spec = pl.BlockSpec((C_PAD, C_PAD), lambda i, k: (0, 0))
    b_spec = pl.BlockSpec((1, C_PAD), lambda i, k: (0, 0))
    out_spec = pl.BlockSpec((tile_m, C_PAD), lambda i, k: (i, 0))
    acc_scratch = [pltpu.VMEM((tile_m, C_PAD), jnp.float32)]

    mm_flops = 2 * n_pad * n_pad * C_PAD + 2 * n_pad * C_PAD * C_PAD
    common_bytes = (2 * n_pad * n_pad            # A_hat (bf16)
                    + 2 * n_pad * C_PAD          # X / H input (bf16), read once
                    + 2 * C_PAD * C_PAD + 4 * C_PAD)

    # ---- layer 1: H = relu((A @ X) @ W1 + b1) ----
    h = pl.pallas_call(
        functools.partial(gcn_layer1_stream_kernel, tile_k=tile_k),
        out_shape=jax.ShapeDtypeStruct((n_pad, C_PAD), jnp.bfloat16),
        grid_spec=pltpu.PrefetchScalarGridSpec(
            num_scalar_prefetch=0,
            grid=grid,
            in_specs=[a_spec, feat_spec, w_spec, b_spec],
            out_specs=out_spec,
            scratch_shapes=acc_scratch,
        ),
        compiler_params=cparams,
        cost_estimate=pl.CostEstimate(
            flops=mm_flops,
            transcendentals=0,
            bytes_accessed=common_bytes + 2 * n_pad * C_PAD,   # + H out (bf16)
        ),
    )(a_p, x_p, w1_p, b1_p)

    # ---- layer 2: log_softmax((A @ H) @ W2 + b2) ----
    out_p = pl.pallas_call(
        functools.partial(gcn_layer2_stream_kernel, tile_k=tile_k,
                          num_classes=cout),
        out_shape=jax.ShapeDtypeStruct((n_pad, C_PAD), jnp.float32),
        grid_spec=pltpu.PrefetchScalarGridSpec(
            num_scalar_prefetch=0,
            grid=grid,
            in_specs=[a_spec, feat_spec, w_spec, b_spec],
            out_specs=out_spec,
            scratch_shapes=acc_scratch,
        ),
        compiler_params=cparams,
        cost_estimate=pl.CostEstimate(
            flops=mm_flops,
            transcendentals=n_pad * C_PAD,
            bytes_accessed=common_bytes + 4 * n_pad * C_PAD,   # + output (f32)
        ),
    )(a_p, h, w2_p, b2_p)

    return out_p[:n, :cout]


def net_forward(x, edge_index, params, *, max_resident_nodes=None):
    """Full Net.forward (eval mode). Chooses fused-resident vs streaming path."""
    n, _ = x.shape
    cout = params[2].shape[1]

    vmem_cap = _vmem_capacity_bytes()
    vmem_limit = (3 * vmem_cap) // 4        # ~48 MiB on v7x, ~96 MiB on v5e/v6e
    if max_resident_nodes is None:
        max_resident_nodes = _default_max_resident_nodes(vmem_cap)

    a_hat = gcn_norm_adj(edge_index, n)

    n_pad_fused = _round_up(n, 128)
    if n_pad_fused <= max_resident_nodes:
        return _forward_fused(x, a_hat, params, n, n_pad_fused, cout, vmem_limit)
    return _forward_streaming(x, a_hat, params, n, cout, vmem_limit)


def net_forward_reference(x, edge_index, params):
    """Pure-JAX f32 reference of the PyTorch forward (eval mode)."""
    a = gcn_norm_adj(edge_index, x.shape[0])
    w1, b1, w2, b2 = params
    h = jnp.maximum(a @ (x @ w1) + b1.reshape(1, -1), 0.0)
    z = a @ (h @ w2) + b2.reshape(1, -1)
    return jax.nn.log_softmax(z, axis=1)


def init_params(key, in_channels, hidden_channels, out_channels):
    """Deterministic glorot-uniform weights + zero biases (GCNConv defaults)."""
    k1, k2 = jax.random.split(key)

    def glorot(k, fan_in, fan_out):
        limit = jnp.sqrt(6.0 / (fan_in + fan_out))
        return jax.random.uniform(k, (fan_in, fan_out), jnp.float32, -limit, limit)

    w1 = glorot(k1, in_channels, hidden_channels)
    b1 = jnp.zeros((1, hidden_channels), jnp.float32)
    w2 = glorot(k2, hidden_channels, out_channels)
    b2 = jnp.zeros((1, out_channels), jnp.float32)
    return (w1, b1, w2, b2)


if __name__ == "__main__":
    NUM_NODES = 16
    IN_CHANNELS = 8
    HIDDEN_CHANNELS = 32
    OUT_CHANNELS = 4

    key = jax.random.PRNGKey(0)
    kx, kp = jax.random.split(key)

    # node features
    x = jax.random.normal(kx, (NUM_NODES, IN_CHANNELS), jnp.float32)

    # deterministic ring graph, both directions: (2, E)
    src = jnp.arange(NUM_NODES, dtype=jnp.int32)
    dst = (src + 1) % NUM_NODES
    edge_index = jnp.stack(
        [jnp.concatenate([src, dst]), jnp.concatenate([dst, src])], axis=0
    )

    params = init_params(kp, IN_CHANNELS, HIDDEN_CHANNELS, OUT_CHANNELS)
    ref = net_forward_reference(x, edge_index, params)

    # Default path for a small graph: fused, fully VMEM-resident, single launch.
    out_fused = jax.block_until_ready(net_forward(x, edge_index, params))
    assert out_fused.shape == (NUM_NODES, OUT_CHANNELS)
    # sanity: log_softmax rows sum to 1 in prob space
    assert bool(jnp.all(jnp.abs(jnp.sum(jnp.exp(out_fused), axis=1) - 1.0) < 1e-3))
    # bf16 matmul operands with f32 accumulation -> loose atol vs f32 reference
    assert bool(jnp.all(jnp.abs(out_fused - ref) < 0.1))

    # Also exercise the large-graph streaming path (rectangular A tiles,
    # grid-invariant resident X/H) by forcing it on the same small graph.
    out_stream = jax.block_until_ready(
        net_forward(x, edge_index, params, max_resident_nodes=0))
    assert out_stream.shape == (NUM_NODES, OUT_CHANNELS)
    assert bool(jnp.all(jnp.abs(jnp.sum(jnp.exp(out_stream), axis=1) - 1.0) < 1e-3))
    assert bool(jnp.all(jnp.abs(out_stream - ref) < 0.1))

    print("KERNEL_OK")
</pallas_src>

<mosaic_0001>
module attributes {stable_mosaic.version = 11 : i64} {
  func.func @gcn_fused_kernel(%arg0: memref<128x128xbf16, #tpu.memory_space<vmem>>, %arg1: memref<128x128xbf16, #tpu.memory_space<vmem>>, %arg2: memref<128x128xbf16, #tpu.memory_space<vmem>>, %arg3: memref<1x128xf32, #tpu.memory_space<vmem>>, %arg4: memref<128x128xbf16, #tpu.memory_space<vmem>>, %arg5: memref<1x128xf32, #tpu.memory_space<vmem>>, %arg6: memref<128x128xf32, #tpu.memory_space<vmem>>) attributes {dimension_semantics = [], scalar_prefetch = 0 : i64, scratch_operands = 0 : i64, tpu.core_type = #tpu.core_type<tc>} {
    %c0 = arith.constant 0 : index
    %c0_0 = arith.constant 0 : index
    %0 = vector.load %arg0[%c0, %c0_0] : memref<128x128xbf16, #tpu.memory_space<vmem>>, vector<128x128xbf16>
    %c0_1 = arith.constant 0 : index
    %c0_2 = arith.constant 0 : index
    %1 = vector.load %arg1[%c0_1, %c0_2] : memref<128x128xbf16, #tpu.memory_space<vmem>>, vector<128x128xbf16>
    %cst = arith.constant dense<0.000000e+00> : vector<128x128xf32>
    %2 = tpu.matmul %0, %1, %cst {dimension_numbers = #tpu.dot_dimension_numbers<[1], [0], [0], [1], [0, 0, 1, 1], [], []>} : vector<128x128xbf16>, vector<128x128xbf16>, vector<128x128xf32> -> vector<128x128xf32>
    %3 = arith.truncf %2 : vector<128x128xf32> to vector<128x128xbf16>
    %c0_3 = arith.constant 0 : index
    %c0_4 = arith.constant 0 : index
    %4 = vector.load %arg2[%c0_3, %c0_4] : memref<128x128xbf16, #tpu.memory_space<vmem>>, vector<128x128xbf16>
    %cst_5 = arith.constant dense<0.000000e+00> : vector<128x128xf32>
    %5 = tpu.matmul %3, %4, %cst_5 {dimension_numbers = #tpu.dot_dimension_numbers<[1], [0], [0], [1], [0, 0, 1, 1], [], []>} : vector<128x128xbf16>, vector<128x128xbf16>, vector<128x128xf32> -> vector<128x128xf32>
    %c0_6 = arith.constant 0 : index
    %c0_7 = arith.constant 0 : index
    %6 = vector.load %arg3[%c0_6, %c0_7] : memref<1x128xf32, #tpu.memory_space<vmem>>, vector<1x128xf32>
    %7 = vector.broadcast %6 : vector<1x128xf32> to vector<128x128xf32>
    %8 = arith.addf %5, %7 : vector<128x128xf32>
    %cst_8 = arith.constant 0.000000e+00 : f32
    %9 = vector.broadcast %cst_8 : f32 to vector<128x128xf32>
    %10 = arith.maximumf %8, %9 : vector<128x128xf32>
    %11 = arith.truncf %10 : vector<128x128xf32> to vector<128x128xbf16>
    %cst_9 = arith.constant dense<0.000000e+00> : vector<128x128xf32>
    %12 = tpu.matmul %0, %11, %cst_9 {dimension_numbers = #tpu.dot_dimension_numbers<[1], [0], [0], [1], [0, 0, 1, 1], [], []>} : vector<128x128xbf16>, vector<128x128xbf16>, vector<128x128xf32> -> vector<128x128xf32>
    %13 = arith.truncf %12 : vector<128x128xf32> to vector<128x128xbf16>
    %c0_10 = arith.constant 0 : index
    %c0_11 = arith.constant 0 : index
    %14 = vector.load %arg4[%c0_10, %c0_11] : memref<128x128xbf16, #tpu.memory_space<vmem>>, vector<128x128xbf16>
    %cst_12 = arith.constant dense<0.000000e+00> : vector<128x128xf32>
    %15 = tpu.matmul %13, %14, %cst_12 {dimension_numbers = #tpu.dot_dimension_numbers<[1], [0], [0], [1], [0, 0, 1, 1], [], []>} : vector<128x128xbf16>, vector<128x128xbf16>, vector<128x128xf32> -> vector<128x128xf32>
    %c0_13 = arith.constant 0 : index
    %c0_14 = arith.constant 0 : index
    %16 = vector.load %arg5[%c0_13, %c0_14] : memref<1x128xf32, #tpu.memory_space<vmem>>, vector<1x128xf32>
    %17 = vector.broadcast %16 : vector<1x128xf32> to vector<128x128xf32>
    %18 = arith.addf %15, %17 : vector<128x128xf32>
    %19 = tpu.iota {dimensions = array<i32: 1>} : vector<128x128xi32>
    %c4_i32 = arith.constant 4 : i32
    %20 = vector.broadcast %c4_i32 : i32 to vector<128x128xi32>
    %21 = arith.cmpi slt, %19, %20 : vector<128x128xi32>
    %cst_15 = arith.constant -1.000000e+30 : f32
    %22 = vector.broadcast %cst_15 : f32 to vector<128x128xf32>
    %23 = arith.select %21, %18, %22 : vector<128x128xi1>, vector<128x128xf32>
    %cst_16 = arith.constant dense<0xFF800000> : vector<128xf32>
    %24 = vector.multi_reduction <maximumf>, %23, %cst_16 [1] : vector<128x128xf32> to vector<128xf32>
    %25 = vector.shape_cast %24 : vector<128xf32> to vector<128x1xf32>
    %26 = vector.broadcast %25 : vector<128x1xf32> to vector<128x128xf32>
    %27 = arith.subf %23, %26 : vector<128x128xf32>
    %28 = math.exp %27 : vector<128x128xf32>
    %cst_17 = arith.constant dense<0.000000e+00> : vector<128xf32>
    %29 = vector.multi_reduction <add>, %28, %cst_17 [1] : vector<128x128xf32> to vector<128xf32>
    %30 = vector.shape_cast %29 : vector<128xf32> to vector<128x1xf32>
    %31 = math.log %30 : vector<128x1xf32>
    %32 = vector.broadcast %31 : vector<128x1xf32> to vector<128x128xf32>
    %33 = arith.subf %27, %32 : vector<128x128xf32>
    %c0_18 = arith.constant 0 : index
    %c0_19 = arith.constant 0 : index
    %34 = vector.load %arg6[%c0_18, %c0_19] : memref<128x128xf32, #tpu.memory_space<vmem>>, vector<128x128xf32>
    tpu.vector_store %arg6[%c0_18, %c0_19], %33 {strides = array<i32>} : memref<128x128xf32, #tpu.memory_space<vmem>>, vector<128x128xf32>,
    return
  }
}

</mosaic_0001>

<bundles_post_ra>
// kernel: tpu_custom_call.1
= control target key start
LH: loop header
LB: loop body
LE: loop exit
PB: predicated region body
PF: predicated region fallthrough
CT: control target
= control target key end

     0   :  { %11 = vsyncpa [#allocation3], 0  ;;  %s1728_s0 = inlined_call_operand.hbm [shape: bf16[128,128], index: 0, kind: input, shape index: {}]   ;;  %s1729_s1 = inlined_call_operand.hbm [shape: bf16[128,128], index: 1, kind: input, shape index: {}]   ;;  %s1730_s2 = inlined_call_operand.hbm [shape: bf16[128,128], index: 2, kind: input, shape index: {}]   ;;  %s1731_s3 = inlined_call_operand.vmem [shape: f32[1,128], index: 3, kind: input, shape index: {}]   ;;  %s1732_s4 = inlined_call_operand.hbm [shape: bf16[128,128], index: 4, kind: input, shape index: {}]   ;;  %s1733_s5 = inlined_call_operand.vmem [shape: f32[1,128], index: 5, kind: input, shape index: {}]   ;;  %s1734_s6 = inlined_call_operand.hbm [shape: f32[128,128], index: 6, kind: output, shape index: {}]  }
   0x1   :  { %12 = vsyncpa [#allocation6], 0 }
   0x2   :  { %13 = vsyncpa [#allocation9], 0 }
   0x3   :  { %14 = vsyncpa [#allocation4], 0  ;;  %s1441_s21 = smov [#allocation5]   ;;  %s1442_s23 = smov [#allocation2]  }
   0x4   :  { %s32_s22 = sshll.u32 %s1441_s21, 4  ;;  %s20_s24 = sshll.u32 %s1442_s23, 4  ;;  %s33_s22 = int_to_ptr.vmem [resolvable:$true] %s32_s22  ;;  %s1485_s24 = int_to_ptr.vmem [resolvable:$true] %s20_s24 }
   0x5   :  { %s1323_s27 = scalar_lea.hbm %s1729_s1, 1024 }
   0x6   :  { %p1324_p0 = scmp.ne.s32.totalorder %s1729_s1, %s1323_s27  ;;  %p1327_p1 = scmp.lt.u32.totalorder %s1323_s27, %s1729_s1 }
   0x8   :  { %p1329_p2 = pnand %p1327_p1, %p1324_p0 }
   0xa   :  { %1332 = shalt.err (!%p1329_p2)
}
   0xb   :  { %s1333_s8 = scalar_lea.vmem %s33_s22, 1024  ;;  %p1338_p4 = scmp.lt.s32.totalorder %s33_s22, %s33_s22 }
   0xc   :  { %p1334_p3 = scmp.ne.s32.totalorder %s33_s22, %s1333_s8  ;;  %p1339_p5 = scmp.lt.s32.totalorder %s1333_s8, %s1333_s8 }
   0xe   :  { %p1340_p6 = por %p1339_p5, %p1338_p4 }
  0x10   :  { %p1341_p7 = pnand %p1340_p6, %p1334_p3 }
  0x12   :  { %1344 = shalt.err (!%p1341_p7)
}
  0x13   :  { %s1443_s9 = smov 64   ;;  %s1444_s10 = smov 4  }
  0x14   :  { %38 = dma.hbm_to_vmem [thread:$0]  %s1729_s1, 1024, %s33_s22, [#allocation6], %s1443_s9, %s1443_s9, %s1444_s10  }
  0x15   :  { %s1345_s15 = scalar_lea.hbm %s1728_s0, 1024 }
  0x16   :  { %p1346_p8 = scmp.ne.s32.totalorder %s1728_s0, %s1345_s15  ;;  %p1349_p9 = scmp.lt.u32.totalorder %s1345_s15, %s1728_s0 }
  0x18   :  { %p1351_p10 = pnand %p1349_p9, %p1346_p8 }
  0x1a   :  { %1354 = shalt.err (!%p1351_p10)
}
  0x1b   :  { %s1355_s20 = scalar_lea.vmem %s1485_s24, 1024  ;;  %p1360_p12 = scmp.lt.s32.totalorder %s1485_s24, %s1485_s24 }
  0x1c   :  { %p1356_p11 = scmp.ne.s32.totalorder %s1485_s24, %s1355_s20  ;;  %p1361_p13 = scmp.lt.s32.totalorder %s1355_s20, %s1355_s20 }
  0x1e   :  { %p1362_p0 = por %p1361_p13, %p1360_p12 }
  0x20   :  { %p1363_p1 = pnand %p1362_p0, %p1356_p11 }
  0x22   :  { %1366 = shalt.err (!%p1363_p1)
}
  0x23   :  { %26 = dma.hbm_to_vmem [thread:$0]  %s1728_s0, 1024, %s1485_s24, [#allocation3], %s1443_s9, %s1443_s9, %s1444_s10  }
  0x24   :  { %s1445_s22 = smov [#allocation7]   ;;  %s1446_s25 = smov [#allocation8]  }
  0x25   :  { %s44_s23 = sshll.u32 %s1445_s22, 4  ;;  %s58_s26 = sshll.u32 %s1446_s25, 4  ;;  %s45_s23 = int_to_ptr.vmem [resolvable:$true] %s44_s23  ;;  %s1522_s26 = int_to_ptr.vmem [resolvable:$true] %s58_s26 }
  0x26   :  { %s1367_s29 = scalar_lea.hbm %s1730_s2, 1024 }
  0x27   :  { %p1368_p2 = scmp.ne.s32.totalorder %s1730_s2, %s1367_s29  ;;  %p1371_p3 = scmp.lt.u32.totalorder %s1367_s29, %s1730_s2 }
  0x29   :  { %p1373_p4 = pnand %p1371_p3, %p1368_p2 }
  0x2b   :  { %1376 = shalt.err (!%p1373_p4)
}
  0x2c   :  { %s1377_s0 = scalar_lea.vmem %s45_s23, 1024  ;;  %p1382_p6 = scmp.lt.s32.totalorder %s45_s23, %s45_s23 }
  0x2d   :  { %p1378_p5 = scmp.ne.s32.totalorder %s45_s23, %s1377_s0  ;;  %p1383_p7 = scmp.lt.s32.totalorder %s1377_s0, %s1377_s0 }
  0x2f   :  { %p1384_p8 = por %p1383_p7, %p1382_p6 }
  0x31   :  { %p1385_p9 = pnand %p1384_p8, %p1378_p5 }
  0x33   :  { %1388 = shalt.err (!%p1385_p9)
}
  0x34   :  { %50 = dma.hbm_to_vmem [thread:$0]  %s1730_s2, 1024, %s45_s23, [#allocation6], %s1443_s9, %s1443_s9, %s1444_s10  }
  0x35   :  { %s1389_s15 = scalar_lea.hbm %s1732_s4, 1024 }
  0x36   :  { %p1390_p10 = scmp.ne.s32.totalorder %s1732_s4, %s1389_s15  ;;  %p1393_p11 = scmp.lt.u32.totalorder %s1389_s15, %s1732_s4 }
  0x38   :  { %p1395_p12 = pnand %p1393_p11, %p1390_p10 }
  0x3a   :  { %1398 = shalt.err (!%p1395_p12)
}
  0x3b   :  { %s1399_s20 = scalar_lea.vmem %s1522_s26, 1024  ;;  %p1404_p0 = scmp.lt.s32.totalorder %s1522_s26, %s1522_s26 }
  0x3c   :  { %p1400_p13 = scmp.ne.s32.totalorder %s1522_s26, %s1399_s20  ;;  %p1405_p1 = scmp.lt.s32.totalorder %s1399_s20, %s1399_s20 }
  0x3e   :  { %p1406_p2 = por %p1405_p1, %p1404_p0 }
  0x40   :  { %p1407_p3 = pnand %p1406_p2, %p1400_p13 }
  0x42   :  { %1410 = shalt.err (!%p1407_p3)
}
  0x43   :  { %64 = dma.hbm_to_vmem [thread:$0]  %s1732_s4, 1024, %s1522_s26, [#allocation9], %s1443_s9, %s1443_s9, %s1444_s10  }
  0x44   :  { %1433 = dma.done.wait [#allocation3], 1024  }
  0x45   :  { %1434 = vsyncadd [#allocation3], 4294966272 }
  0x46   :  { %1435 = dma.done.wait [#allocation6], 2048  }
  0x47   :  { %1436 = vsyncadd [#allocation6], 4294965248 }
  0x48   :  { %1437 = dma.done.wait [#allocation9], 1024  }
  0x49   :  { %1438 = vsyncadd [#allocation9], 4294966272  ;;  %v1227_v0 = vld [vmem:[#allocation5] sm:$0xff]   ;;  %v1228_v1 = vld [vmem:[#allocation5 + $0x8] sm:$0xff]  }
  0x4a   :  { %1090 = vmatprep.subr.bf16.mxu0 %v1227_v0  ;;  %v1229_v2 = vld [vmem:[#allocation5 + $0x10] sm:$0xff]   ;;  %v1230_v3 = vld [vmem:[#allocation5 + $0x18] sm:$0xff]   ;;  %v1235_v4 = vld [vmem:[#allocation2] sm:$0xff]  }
  0x4b   :  { %1091 = vmatpush3.bf16.msra.mxu0 %v1227_v0  ;;  %1106 = vmatprep.mubr.bf16.mxu0 %v1235_v4  ;;  %v1231_v5 = vld [vmem:[#allocation5 + $0x20] sm:$0xff]   ;;  %v1232_v6 = vld [vmem:[#allocation5 + $0x28] sm:$0xff]   ;;  %v1233_v9 = vld [vmem:[#allocation5 + $0x30] sm:$0xff]  }
  0x4c   :  { %1092 = vmatprep.subr.bf16.mxu0 %v1228_v1  ;;  %v1243_v7 = vld [vmem:[#allocation7] sm:$0xff]   ;;  %v1244_v8 = vld [vmem:[#allocation7 + $0x8] sm:$0xff]   ;;  %v1245_v10 = vld [vmem:[#allocation7 + $0x10] sm:$0xff]  }
  0x4d   :  { %1122 = vmatprep.subr.bf16.mxu1 %v1243_v7  ;;  %v1234_v11 = vld [vmem:[#allocation5 + $0x38] sm:$0xff]   ;;  %v1247_v13 = vld [vmem:[#allocation7 + $0x20] sm:$0xff]   ;;  %v1559_v14 = vld [vmem:[#allocation2 + $0x8] sm:$0xff]  }
  0x4e   :  { %1123 = vmatpush3.bf16.msra.mxu1 %v1243_v7  ;;  %v1246_v12 = vld [vmem:[#allocation7 + $0x18] sm:$0xff]   ;;  %v1561_v15 = vld [vmem:[#allocation2 + $0x10] sm:$0xff]   ;;  %v1248_v16 = vld [vmem:[#allocation7 + $0x28] sm:$0xff]  }
  0x4f   :  { %1093 = vmatpush3.bf16.msra.mxu0 %v1228_v1  ;;  %1124 = vmatprep.subr.bf16.mxu1 %v1244_v8  ;;  %v1249_v17 = vld [vmem:[#allocation7 + $0x30] sm:$0xff]   ;;  %v1565_v18 = vld [vmem:[#allocation2 + $0x18] sm:$0xff]   ;;  %v1567_v19 = vld [vmem:[#allocation2 + $0x20] sm:$0xff]  }
  0x50   :  { %1094 = vmatprep.subr.bf16.mxu0 %v1229_v2  ;;  %v1571_v20 = vld [vmem:[#allocation2 + $0x28] sm:$0xff]   ;;  %v1573_v21 = vld [vmem:[#allocation2 + $0x30] sm:$0xff]   ;;  %v1577_v22 = vld [vmem:[#allocation2 + $0x38] sm:$0xff]  }
  0x51   :  { %v1250_v23 = vld [vmem:[#allocation7 + $0x38] sm:$0xff]   ;;  %v1251_v48 = vld [vmem:[#allocation8] sm:$0xff]   ;;  %v1252_v49 = vld [vmem:[#allocation8 + $0x8] sm:$0xff]  }
  0x52   :  { %1125 = vmatpush3.bf16.msra.mxu1 %v1244_v8  ;;  %v1253_v50 = vld [vmem:[#allocation8 + $0x10] sm:$0xff]   ;;  %v1254_v51 = vld [vmem:[#allocation8 + $0x18] sm:$0xff]   ;;  %v1255_v52 = vld [vmem:[#allocation8 + $0x20] sm:$0xff]  }
  0x53   :  { %1095 = vmatpush3.bf16.msra.mxu0 %v1229_v2  ;;  %1126 = vmatprep.subr.bf16.mxu1 %v1245_v10  ;;  %v1256_v53 = vld [vmem:[#allocation8 + $0x28] sm:$0xff]   ;;  %v1257_v54 = vld [vmem:[#allocation8 + $0x30] sm:$0xff]   ;;  %v1008_v55 = vld [vmem:[%s1731_s3] ss:$0 sm:$0xff] }
  0x54   :  { %1096 = vmatprep.subr.bf16.mxu0 %v1230_v3 }
  0x56   :  { %1127 = vmatpush3.bf16.msra.mxu1 %v1245_v10 }
  0x57   :  { %1097 = vmatpush3.bf16.msra.mxu0 %v1230_v3  ;;  %1128 = vmatprep.subr.bf16.mxu1 %v1246_v12 }
  0x58   :  { %1098 = vmatprep.subr.bf16.mxu0 %v1231_v5 }
  0x5a   :  { %1129 = vmatpush3.bf16.msra.mxu1 %v1246_v12 }
  0x5b   :  { %1099 = vmatpush3.bf16.msra.mxu0 %v1231_v5  ;;  %1130 = vmatprep.subr.bf16.mxu1 %v1247_v13 }
  0x5c   :  { %1100 = vmatprep.subr.bf16.mxu0 %v1232_v6 }
  0x5e   :  { %1131 = vmatpush3.bf16.msra.mxu1 %v1247_v13 }
  0x5f   :  { %1101 = vmatpush3.bf16.msra.mxu0 %v1232_v6  ;;  %1132 = vmatprep.subr.bf16.mxu1 %v1248_v16 }
  0x60   :  { %1102 = vmatprep.subr.bf16.mxu0 %v1233_v9 }
  0x62   :  { %1133 = vmatpush3.bf16.msra.mxu1 %v1248_v16 }
  0x63   :  { %1103 = vmatpush3.bf16.msra.mxu0 %v1233_v9  ;;  %1134 = vmatprep.subr.bf16.mxu1 %v1249_v17 }
  0x64   :  { %1104 = vmatprep.subr.bf16.mxu0 %v1234_v11 }
  0x66   :  { %1135 = vmatpush3.bf16.msra.mxu1 %v1249_v17 }
  0x67   :  { %1105 = vmatpush3.bf16.msra.mxu0 %v1234_v11  ;;  %1136 = vmatprep.subr.bf16.mxu1 %v1250_v23 }
  0x6a   :  { %1107 = vmatmul.mubr.bf16.vlgmr.msra.gmra.mrb[0].mxu0 %v1559_v14  ;;  %1137 = vmatpush3.bf16.msra.mxu1 %v1250_v23 }
  0x6b   :  { %1110 = vmatprep.mubr.bf16.mxu0 %v1561_v15  ;;  %1186 = vmatprep.subr.bf16.mxu1 %v1251_v48 }
  0x72   :  { %1111 = vmatmul.mubr.bf16.gmra.mrb[4].mxu0 %v1565_v18 }
  0x73   :  { %1114 = vmatprep.mubr.bf16.mxu0 %v1567_v19 }
  0x7a   :  { %1115 = vmatmul.mubr.bf16.gmra.mrb[8].mxu0 %v1571_v20 }
  0x7b   :  { %1118 = vmatprep.mubr.bf16.mxu0 %v1573_v21 }
  0x82   :  { %1119 = vmatmul.mubr.bf16.gmra.mrb[12].mxu0 %v1577_v22 }
  0x83   :  { %1170 = vmatprep.mubr.bf16.mxu0 %v1235_v4 }
 0x13d   :  { %v1108_v24 = vpop.f32.mrb[0].mxu0 }
 0x13e   :  { %v242_v25 = vpop.f32.mrb[1].mxu0 }
 0x13f   :  { %v1109_v26 = vpop.f32.mrb[2].mxu0 }
 0x140   :  { %v306_v27 = vpack.c.bf16 %v1109_v26, %v1108_v24  ;;  %v245_v28 = vpop.f32.mrb[3].mxu0 }
 0x141   :  { %v305_v29 = vpack.c.bf16 %v245_v28, %v242_v25 }
 0x143   :  { %1138 = vmatprep.mubr.bf16.mxu1 %v305_v29 }
 0x144   :  { %1139 = vmatmul.mubr.bf16.vlgmr.msra.gmra.mrb[0].mxu1 %v306_v27 }
 0x145   :  { %v1112_v30 = vpop.f32.mrb[4].mxu0  ;;  %1187 = vmatpush3.bf16.msra.mxu1 %v1251_v48 }
 0x146   :  { %v258_v31 = vpop.f32.mrb[5].mxu0  ;;  %1188 = vmatprep.subr.bf16.mxu1 %v1252_v49 }
 0x147   :  { %v1113_v32 = vpop.f32.mrb[6].mxu0 }
 0x148   :  { %v308_v33 = vpack.c.bf16 %v1113_v32, %v1112_v30  ;;  %v261_v34 = vpop.f32.mrb[7].mxu0 }
 0x149   :  { %v307_v35 = vpack.c.bf16 %v261_v34, %v258_v31  ;;  %1189 = vmatpush3.bf16.msra.mxu1 %v1252_v49 }
 0x14a   :  { %1190 = vmatprep.subr.bf16.mxu1 %v1253_v50 }
 0x14b   :  { %1142 = vmatprep.mubr.bf16.mxu1 %v307_v35 }
 0x14c   :  { %1143 = vmatmul.mubr.bf16.gmra.mrb[4].mxu1 %v308_v33 }
 0x14d   :  { %v1116_v36 = vpop.f32.mrb[8].mxu0  ;;  %1191 = vmatpush3.bf16.msra.mxu1 %v1253_v50 }
 0x14e   :  { %v274_v37 = vpop.f32.mrb[9].mxu0  ;;  %1192 = vmatprep.subr.bf16.mxu1 %v1254_v51 }
 0x14f   :  { %v1117_v38 = vpop.f32.mrb[10].mxu0 }
 0x150   :  { %v310_v39 = vpack.c.bf16 %v1117_v38, %v1116_v36  ;;  %v277_v40 = vpop.f32.mrb[11].mxu0 }
 0x151   :  { %v309_v41 = vpack.c.bf16 %v277_v40, %v274_v37  ;;  %1193 = vmatpush3.bf16.msra.mxu1 %v1254_v51 }
 0x152   :  { %1194 = vmatprep.subr.bf16.mxu1 %v1255_v52 }
 0x153   :  { %1146 = vmatprep.mubr.bf16.mxu1 %v309_v41 }
 0x154   :  { %1147 = vmatmul.mubr.bf16.gmra.mrb[8].mxu1 %v310_v39 }
 0x155   :  { %v1120_v42 = vpop.f32.mrb[12].mxu0  ;;  %1195 = vmatpush3.bf16.msra.mxu1 %v1255_v52 }
 0x156   :  { %v290_v43 = vpop.f32.mrb[13].mxu0  ;;  %1196 = vmatprep.subr.bf16.mxu1 %v1256_v53 }
 0x157   :  { %v1121_v44 = vpop.f32.mrb[14].mxu0 }
 0x158   :  { %v312_v45 = vpack.c.bf16 %v1121_v44, %v1120_v42  ;;  %v293_v46 = vpop.f32.mrb[15].mxu0 }
 0x159   :  { %v311_v47 = vpack.c.bf16 %v293_v46, %v290_v43  ;;  %1197 = vmatpush3.bf16.msra.mxu1 %v1256_v53 }
 0x15a   :  { %1198 = vmatprep.subr.bf16.mxu1 %v1257_v54 }
 0x15b   :  { %1150 = vmatprep.mubr.bf16.mxu1 %v311_v47 }
 0x15c   :  { %1151 = vmatmul.mubr.bf16.gmra.mrb[12].mxu1 %v312_v45 }
 0x15d   :  { %1199 = vmatpush3.bf16.msra.mxu1 %v1257_v54 }
 0x217   :  { %v1140_v56 = vpop.f32.mrb[0].mxu1 }
 0x218   :  { %v427_v57 = vadd.f32 %v1140_v56, %v1008_v55  ;;  %v418_v58 = vpop.f32.mrb[1].mxu1 }
 0x219   :  { %v419_v59 = vadd.f32 %v1008_v55, %v418_v58  ;;  %v1141_v60 = vpop.f32.mrb[2].mxu1 }
 0x21a   :  { %v430_v61 = vadd.f32 %v1141_v60, %v1008_v55  ;;  %v421_v62 = vpop.f32.mrb[3].mxu1  ;;  %v483_v0 = vmax.f32 %v427_v57, 0.0 }
 0x21b   :  { %v422_v63 = vadd.f32 %v1008_v55, %v421_v62  ;;  %v481_v2 = vmax.f32 %v419_v59, 0.0 }
 0x21c   :  { %v484_v1 = vmax.f32 %v430_v61, 0.0 }
 0x21d   :  { %v482_v3 = vmax.f32 %v422_v63, 0.0 }
 0x21e   :  { %v498_v4 = vpack.c.bf16 %v484_v1, %v483_v0 }
 0x21f   :  { %v497_v5 = vpack.c.bf16 %v482_v3, %v481_v2  ;;  %v1144_v6 = vpop.f32.mrb[4].mxu1 }
 0x220   :  { %v443_v7 = vadd.f32 %v1144_v6, %v1008_v55  ;;  %v434_v8 = vpop.f32.mrb[5].mxu1 }
 0x221   :  { %v435_v9 = vadd.f32 %v1008_v55, %v434_v8  ;;  %v1145_v10 = vpop.f32.mrb[6].mxu1  ;;  %1154 = vmatprep.subr.bf16.mxu0 %v497_v5 }
 0x222   :  { %v446_v11 = vadd.f32 %v1145_v10, %v1008_v55  ;;  %v437_v12 = vpop.f32.mrb[7].mxu1  ;;  %1155 = vmatpush3.bf16.msra.mxu0 %v497_v5  ;;  %v487_v16 = vmax.f32 %v443_v7, 0.0 }
 0x223   :  { %v438_v13 = vadd.f32 %v1008_v55, %v437_v12  ;;  %1156 = vmatprep.subr.bf16.mxu0 %v498_v4  ;;  %v485_v23 = vmax.f32 %v435_v9, 0.0  ;;  %v778_v9 = vlaneseq }
 0x224   :  { %v488_v17 = vmax.f32 %v446_v11, 0.0  ;;  %v1017_v11 = vld [vmem:[%s1733_s5] ss:$0 sm:$0xff]  ;;  %s1447_s5 = smov [#allocation10]  }
 0x225   :  { %v486_v24 = vmax.f32 %v438_v13, 0.0  ;;  %v1590_v10 = vand.u32 127, %v778_v9  ;;  %s978_s21 = sshll.u32 %s1447_s5, 4  ;;  %s979_s21 = int_to_ptr.vmem [resolvable:$true] %s978_s21 }
 0x226   :  { %v500_v25 = vpack.c.bf16 %v488_v17, %v487_v16  ;;  %1157 = vmatpush3.bf16.msra.mxu0 %v498_v4  ;;  %s1411_s22 = scalar_lea.vmem %s979_s21, 2048  ;;  %p1416_p5 = scmp.lt.s32.totalorder %s979_s21, %s979_s21 }
 0x227   :  { %v499_v26 = vpack.c.bf16 %v486_v24, %v485_v23  ;;  %v1148_v27 = vpop.f32.mrb[8].mxu1  ;;  %vm780_vm0 = vcmp.lt.s32.totalorder %v1590_v10, 4  ;;  %p1412_p4 = scmp.ne.s32.totalorder %s979_s21, %s1411_s22  ;;  %p1417_p6 = scmp.lt.s32.totalorder %s1411_s22, %s1411_s22 }
 0x228   :  { %v459_v28 = vadd.f32 %v1148_v27, %v1008_v55  ;;  %v450_v29 = vpop.f32.mrb[9].mxu1 }
 0x229   :  { %v451_v30 = vadd.f32 %v1008_v55, %v450_v29  ;;  %v1149_v31 = vpop.f32.mrb[10].mxu1  ;;  %1158 = vmatprep.subr.bf16.mxu0 %v499_v26  ;;  %p1418_p7 = por %p1417_p6, %p1416_p5 }
 0x22a   :  { %v462_v32 = vadd.f32 %v1149_v31, %v1008_v55  ;;  %v453_v33 = vpop.f32.mrb[11].mxu1  ;;  %1159 = vmatpush3.bf16.msra.mxu0 %v499_v26  ;;  %v491_v35 = vmax.f32 %v459_v28, 0.0 }
 0x22b   :  { %v454_v34 = vadd.f32 %v1008_v55, %v453_v33  ;;  %1160 = vmatprep.subr.bf16.mxu0 %v500_v25  ;;  %v489_v37 = vmax.f32 %v451_v30, 0.0  ;;  %p1419_p8 = pnand %p1418_p7, %p1412_p4 }
 0x22c   :  { %v492_v36 = vmax.f32 %v462_v32, 0.0 }
 0x22d   :  { %v490_v38 = vmax.f32 %v454_v34, 0.0 }
 0x22e   :  { %v502_v39 = vpack.c.bf16 %v492_v36, %v491_v35  ;;  %1161 = vmatpush3.bf16.msra.mxu0 %v500_v25 }
 0x22f   :  { %v501_v40 = vpack.c.bf16 %v490_v38, %v489_v37  ;;  %v1152_v41 = vpop.f32.mrb[12].mxu1 }
 0x230   :  { %v475_v42 = vadd.f32 %v1152_v41, %v1008_v55  ;;  %v466_v43 = vpop.f32.mrb[13].mxu1 }
 0x231   :  { %v467_v44 = vadd.f32 %v1008_v55, %v466_v43  ;;  %v1153_v45 = vpop.f32.mrb[14].mxu1  ;;  %1162 = vmatprep.subr.bf16.mxu0 %v501_v40 }
 0x232   :  { %v478_v46 = vadd.f32 %v1153_v45, %v1008_v55  ;;  %v469_v47 = vpop.f32.mrb[15].mxu1  ;;  %1163 = vmatpush3.bf16.msra.mxu0 %v501_v40  ;;  %v495_v49 = vmax.f32 %v475_v42, 0.0 }
 0x233   :  { %v470_v48 = vadd.f32 %v1008_v55, %v469_v47  ;;  %1164 = vmatprep.subr.bf16.mxu0 %v502_v39  ;;  %v493_v51 = vmax.f32 %v467_v44, 0.0  ;;  %v1258_v55 = vld [vmem:[#allocation8 + $0x38] sm:$0xff]  }
 0x234   :  { %v496_v50 = vmax.f32 %v478_v46, 0.0  ;;  %1200 = vmatprep.subr.bf16.mxu1 %v1258_v55 }
 0x235   :  { %v494_v52 = vmax.f32 %v470_v48, 0.0  ;;  %1201 = vmatpush3.bf16.msra.mxu1 %v1258_v55 }
 0x236   :  { %v504_v53 = vpack.c.bf16 %v496_v50, %v495_v49  ;;  %1165 = vmatpush3.bf16.msra.mxu0 %v502_v39 }
 0x237   :  { %v503_v54 = vpack.c.bf16 %v494_v52, %v493_v51 }
 0x239   :  { %1166 = vmatprep.subr.bf16.mxu0 %v503_v54 }
 0x23a   :  { %1167 = vmatpush3.bf16.msra.mxu0 %v503_v54 }
 0x23b   :  { %1168 = vmatprep.subr.bf16.mxu0 %v504_v53 }
 0x23e   :  { %1169 = vmatpush3.bf16.msra.mxu0 %v504_v53 }
 0x241   :  { %1171 = vmatmul.mubr.bf16.vlgmr.msra.gmra.mrb[16].mxu0 %v1559_v14 }
 0x242   :  { %1174 = vmatprep.mubr.bf16.mxu0 %v1561_v15 }
 0x249   :  { %1175 = vmatmul.mubr.bf16.gmra.mrb[20].mxu0 %v1565_v18 }
 0x24a   :  { %1178 = vmatprep.mubr.bf16.mxu0 %v1567_v19 }
 0x251   :  { %1179 = vmatmul.mubr.bf16.gmra.mrb[24].mxu0 %v1571_v20 }
 0x252   :  { %1182 = vmatprep.mubr.bf16.mxu0 %v1573_v21 }
 0x259   :  { %1183 = vmatmul.mubr.bf16.gmra.mrb[28].mxu0 %v1577_v22 }
 0x314   :  { %v1172_v56 = vpop.f32.mrb[16].mxu0 }
 0x315   :  { %v539_v57 = vpop.f32.mrb[17].mxu0 }
 0x316   :  { %v1173_v58 = vpop.f32.mrb[18].mxu0 }
 0x317   :  { %v603_v59 = vpack.c.bf16 %v1173_v58, %v1172_v56  ;;  %v542_v14 = vpop.f32.mrb[19].mxu0 }
 0x318   :  { %v602_v60 = vpack.c.bf16 %v542_v14, %v539_v57 }
 0x31a   :  { %1202 = vmatprep.mubr.bf16.mxu1 %v602_v60 }
 0x31b   :  { %1203 = vmatmul.mubr.bf16.vlgmr.msra.gmra.mrb[16].mxu1 %v603_v59 }
 0x31c   :  { %v1176_v15 = vpop.f32.mrb[20].mxu0 }
 0x31d   :  { %v555_v18 = vpop.f32.mrb[21].mxu0 }
 0x31e   :  { %v1177_v19 = vpop.f32.mrb[22].mxu0 }
 0x31f   :  { %v605_v61 = vpack.c.bf16 %v1177_v19, %v1176_v15  ;;  %v558_v20 = vpop.f32.mrb[23].mxu0 }
 0x320   :  { %v604_v62 = vpack.c.bf16 %v558_v20, %v555_v18 }
 0x322   :  { %1206 = vmatprep.mubr.bf16.mxu1 %v604_v62 }
 0x323   :  { %1207 = vmatmul.mubr.bf16.gmra.mrb[20].mxu1 %v605_v61 }
 0x324   :  { %v1180_v21 = vpop.f32.mrb[24].mxu0 }
 0x325   :  { %v571_v22 = vpop.f32.mrb[25].mxu0 }
 0x326   :  { %v1181_v63 = vpop.f32.mrb[26].mxu0 }
 0x327   :  { %v607_v0 = vpack.c.bf16 %v1181_v63, %v1180_v21  ;;  %v574_v1 = vpop.f32.mrb[27].mxu0 }
 0x328   :  { %v606_v2 = vpack.c.bf16 %v574_v1, %v571_v22 }
 0x32a   :  { %1210 = vmatprep.mubr.bf16.mxu1 %v606_v2 }
 0x32b   :  { %1211 = vmatmul.mubr.bf16.gmra.mrb[24].mxu1 %v607_v0 }
 0x32c   :  { %v1184_v3 = vpop.f32.mrb[28].mxu0 }
 0x32d   :  { %v587_v4 = vpop.f32.mrb[29].mxu0 }
 0x32e   :  { %v1185_v5 = vpop.f32.mrb[30].mxu0 }
 0x32f   :  { %v609_v6 = vpack.c.bf16 %v1185_v5, %v1184_v3  ;;  %v590_v7 = vpop.f32.mrb[31].mxu0 }
 0x330   :  { %v608_v8 = vpack.c.bf16 %v590_v7, %v587_v4 }
 0x332   :  { %1214 = vmatprep.mubr.bf16.mxu1 %v608_v8 }
 0x333   :  { %1215 = vmatmul.mubr.bf16.gmra.mrb[28].mxu1 %v609_v6 }
 0x3ee   :  { %v1204_v12 = vpop.f32.mrb[16].mxu1 }
 0x3ef   :  { %v724_v13 = vadd.f32 %v1204_v12, %v1017_v11  ;;  %v715_v16 = vpop.f32.mrb[17].mxu1 }
 0x3f0   :  { %v716_v17 = vadd.f32 %v1017_v11, %v715_v16  ;;  %v1205_v23 = vpop.f32.mrb[18].mxu1 }
 0x3f1   :  { %v727_v24 = vadd.f32 %v1205_v23, %v1017_v11  ;;  %v718_v25 = vpop.f32.mrb[19].mxu1  ;;  %v783_v26 = vsel %vm780_vm0, %v724_v13, -1e+30 }
 0x3f2   :  { %v719_v27 = vadd.f32 %v1017_v11, %v718_v25  ;;  %801 = vmax.xlane.f32.xlu1 %v783_v26  ;;  %v781_v28 = vsel %vm780_vm0, %v716_v17, -1e+30 }
 0x3f3   :  { %797 = vmax.xlane.f32.xlu0 %v781_v28  ;;  %v784_v29 = vsel %vm780_vm0, %v727_v24, -1e+30 }
 0x3f4   :  { %v782_v31 = vsel %vm780_vm0, %v719_v27, -1e+30 }
 0x3f6   :  { %803 = vmax.xlane.f32.xlu1 %v784_v29  ;;  %v1208_v30 = vpop.f32.mrb[20].mxu1 }
 0x3f7   :  { %v740_v32 = vadd.f32 %v1208_v30, %v1017_v11  ;;  %799 = vmax.xlane.f32.xlu0 %v782_v31  ;;  %v731_v33 = vpop.f32.mrb[21].mxu1 }
 0x3f8   :  { %v1209_v34 = vpop.f32.mrb[22].mxu1  ;;  %v732_v38 = vadd.f32 %v1017_v11, %v731_v33 }
 0x3f9   :  { %v743_v35 = vadd.f32 %v1209_v34, %v1017_v11  ;;  %v734_v36 = vpop.f32.mrb[23].mxu1  ;;  %v787_v37 = vsel %vm780_vm0, %v740_v32, -1e+30 }
 0x3fa   :  { %v735_v39 = vadd.f32 %v1017_v11, %v734_v36  ;;  %v785_v42 = vsel %vm780_vm0, %v732_v38, -1e+30 }
 0x3fb   :  { %809 = vmax.xlane.f32.xlu0 %v787_v37  ;;  %v788_v40 = vsel %vm780_vm0, %v743_v35, -1e+30 }
 0x3fc   :  { %811 = vmax.xlane.f32.xlu1 %v788_v40  ;;  %v786_v45 = vsel %vm780_vm0, %v735_v39, -1e+30 }
 0x3fe   :  { %v1212_v41 = vpop.f32.mrb[24].mxu1 }
 0x3ff   :  { %v756_v43 = vadd.f32 %v1212_v41, %v1017_v11  ;;  %805 = vmax.xlane.f32.xlu0 %v785_v42  ;;  %v747_v44 = vpop.f32.mrb[25].mxu1 }
 0x400   :  { %807 = vmax.xlane.f32.xlu1 %v786_v45  ;;  %v1213_v46 = vpop.f32.mrb[26].mxu1  ;;  %v748_v50 = vadd.f32 %v1017_v11, %v747_v44 }
 0x401   :  { %v759_v47 = vadd.f32 %v1213_v46, %v1017_v11  ;;  %v750_v48 = vpop.f32.mrb[27].mxu1  ;;  %v791_v49 = vsel %vm780_vm0, %v756_v43, -1e+30 }
 0x402   :  { %v751_v51 = vadd.f32 %v1017_v11, %v750_v48  ;;  %v1618_v54 = vsel %vm780_vm0, %v748_v50, -1e+30 }
 0x403   :  { %817 = vmax.xlane.f32.xlu0 %v791_v49  ;;  %v792_v52 = vsel %vm780_vm0, %v759_v47, -1e+30 }
 0x404   :  { %819 = vmax.xlane.f32.xlu1 %v792_v52  ;;  %v1623_v56 = vsel %vm780_vm0, %v751_v51, -1e+30 }
 0x406   :  { %v1216_v53 = vpop.f32.mrb[28].mxu1 }
 0x407   :  { %813 = vmax.xlane.f32.xlu0 %v1618_v54  ;;  %v763_v55 = vpop.f32.mrb[29].mxu1  ;;  %v772_v14 = vadd.f32 %v1216_v53, %v1017_v11 }
 0x408   :  { %v764_v57 = vadd.f32 %v1017_v11, %v763_v55  ;;  %815 = vmax.xlane.f32.xlu1 %v1623_v56  ;;  %v1217_v58 = vpop.f32.mrb[30].mxu1 }
 0x409   :  { %v766_v59 = vpop.f32.mrb[31].mxu1  ;;  %v775_v18 = vadd.f32 %v1217_v58, %v1017_v11  ;;  %v1638_v61 = vsel %vm780_vm0, %v772_v14, -1e+30 }
 0x40a   :  { %v767_v60 = vadd.f32 %v1017_v11, %v766_v59  ;;  %v1628_v15 = vsel %vm780_vm0, %v764_v57, -1e+30 }
 0x40b   :  { %821 = vmax.xlane.f32.xlu0 %v1628_v15  ;;  %v1643_v20 = vsel %vm780_vm0, %v775_v18, -1e+30 }
 0x40c   :  { %v1633_v19 = vsel %vm780_vm0, %v767_v60, -1e+30 }
 0x40d   :  { %823 = vmax.xlane.f32.xlu1 %v1633_v19 }
 0x40f   :  { %825 = vmax.xlane.f32.xlu0 %v1638_v61 }
 0x411   :  { %827 = vmax.xlane.f32.xlu1 %v1643_v20 }
 0x47f   :  { %v802_v62 = vpop.xlane.xlu1 %801 }
 0x480   :  { %v1646_v21 = vsub.f32 %v783_v26, %v802_v62  ;;  %v798_v22 = vpop.xlane.xlu0 %797 }
 0x481   :  { %v1648_v63 = vsub.f32 %v781_v28, %v798_v22 }
 0x482   :  { %v849_v0 = vmul.f32 1.442695, %v1646_v21 }
 0x483   :  { %v845_v1 = vmul.f32 1.442695, %v1648_v63  ;;  %v804_v2 = vpop.xlane.xlu1 %803 }
 0x484   :  { %1259 = vpow2.f32 %v849_v0  ;;  %v1652_v3 = vsub.f32 %v784_v29, %v804_v2  ;;  %v800_v4 = vpop.xlane.xlu0 %799 }
 0x485   :  { %v1654_v5 = vsub.f32 %v782_v31, %v800_v4  ;;  %1261 = vpow2.f32 %v845_v1 }
 0x486   :  { %v851_v6 = vmul.f32 1.442695, %v1652_v3 }
 0x487   :  { %v847_v7 = vmul.f32 1.442695, %v1654_v5 }
 0x488   :  { %1263 = vpow2.f32 %v851_v6  ;;  %v810_v8 = vpop.xlane.xlu0 %809 }
 0x489   :  { %v1658_v9 = vsub.f32 %v787_v37, %v810_v8  ;;  %v812_v10 = vpop.xlane.xlu1 %811  ;;  %1265 = vpow2.f32 %v847_v7 }
 0x48a   :  { %v1660_v11 = vsub.f32 %v788_v40, %v812_v10 }
 0x48b   :  { %v857_v12 = vmul.f32 1.442695, %v1658_v9 }
 0x48c   :  { %v859_v13 = vmul.f32 1.442695, %v1660_v11  ;;  %v806_v16 = vpop.xlane.xlu0 %805 }
 0x48d   :  { %1267 = vpow2.f32 %v857_v12  ;;  %v1664_v17 = vsub.f32 %v785_v42, %v806_v16  ;;  %v808_v23 = vpop.xlane.xlu1 %807 }
 0x48e   :  { %v1260_v24 = vpop.eup %1259  ;;  %v1666_v25 = vsub.f32 %v786_v45, %v808_v23  ;;  %1269 = vpow2.f32 %v859_v13 }
 0x48f   :  { %v853_v26 = vmul.f32 1.442695, %v1664_v17  ;;  %881 = vadd.xlane.f32.xlu0 %v1260_v24  ;;  %v1262_v29 = vpop.eup %1261 }
 0x490   :  { %v855_v27 = vmul.f32 1.442695, %v1666_v25  ;;  %v818_v28 = vpop.xlane.xlu0 %817 }
 0x491   :  { %1271 = vpow2.f32 %v853_v26  ;;  %v1670_v30 = vsub.f32 %v791_v49, %v818_v28  ;;  %v820_v31 = vpop.xlane.xlu1 %819 }
 0x492   :  { %v1264_v32 = vpop.eup %1263  ;;  %v1672_v33 = vsub.f32 %v792_v52, %v820_v31  ;;  %1273 = vpow2.f32 %v855_v27 }
 0x493   :  { %v865_v34 = vmul.f32 1.442695, %v1670_v30  ;;  %883 = vadd.xlane.f32.xlu1 %v1264_v32  ;;  %877 = vadd.xlane.f32.xlu0 %v1262_v29  ;;  %v1266_v39 = vpop.eup %1265 }
 0x494   :  { %v867_v35 = vmul.f32 1.442695, %v1672_v33  ;;  %v814_v36 = vpop.xlane.xlu0 %813 }
 0x495   :  { %1275 = vpow2.f32 %v865_v34  ;;  %v1677_v37 = vsub.f32 %v1618_v54, %v814_v36  ;;  %v816_v38 = vpop.xlane.xlu1 %815 }
 0x496   :  { %v1680_v40 = vsub.f32 %v1623_v56, %v816_v38  ;;  %1277 = vpow2.f32 %v867_v35 }
 0x497   :  { %v1268_v41 = vpop.eup %1267  ;;  %v861_v42 = vmul.f32 1.442695, %v1677_v37  ;;  %879 = vadd.xlane.f32.xlu1 %v1266_v39 }
 0x498   :  { %v863_v43 = vmul.f32 1.442695, %v1680_v40  ;;  %889 = vadd.xlane.f32.xlu0 %v1268_v41  ;;  %v822_v44 = vpop.xlane.xlu0 %821  ;;  %v1270_v46 = vpop.eup %1269 }
 0x499   :  { %1279 = vpow2.f32 %v861_v42  ;;  %v1685_v45 = vsub.f32 %v1628_v15, %v822_v44 }
 0x49a   :  { %v824_v47 = vpop.xlane.xlu1 %823  ;;  %1281 = vpow2.f32 %v863_v43 }
 0x49b   :  { %v1272_v48 = vpop.eup %1271  ;;  %v869_v49 = vmul.f32 1.442695, %v1685_v45  ;;  %v1689_v50 = vsub.f32 %v1633_v19, %v824_v47  ;;  %891 = vadd.xlane.f32.xlu1 %v1270_v46 }
 0x49c   :  { %885 = vadd.xlane.f32.xlu0 %v1272_v48  ;;  %v826_v51 = vpop.xlane.xlu0 %825  ;;  %v1274_v54 = vpop.eup %1273 }
 0x49d   :  { %1283 = vpow2.f32 %v869_v49  ;;  %v871_v52 = vmul.f32 1.442695, %v1689_v50  ;;  %v1693_v53 = vsub.f32 %v1638_v61, %v826_v51 }
 0x49e   :  { %v828_v55 = vpop.xlane.xlu1 %827 }
 0x49f   :  { %v1276_v56 = vpop.eup %1275  ;;  %1285 = vpow2.f32 %v871_v52  ;;  %v873_v57 = vmul.f32 1.442695, %v1693_v53  ;;  %v1697_v58 = vsub.f32 %v1643_v20, %v828_v55  ;;  %887 = vadd.xlane.f32.xlu1 %v1274_v54 }
 0x4a0   :  { %897 = vadd.xlane.f32.xlu0 %v1276_v56  ;;  %v1278_v14 = vpop.eup %1277 }
 0x4a1   :  { %1287 = vpow2.f32 %v873_v57  ;;  %v875_v59 = vmul.f32 1.442695, %v1697_v58 }
 0x4a3   :  { %v1280_v60 = vpop.eup %1279  ;;  %1289 = vpow2.f32 %v875_v59  ;;  %899 = vadd.xlane.f32.xlu1 %v1278_v14 }
 0x4a4   :  { %893 = vadd.xlane.f32.xlu0 %v1280_v60  ;;  %v1282_v15 = vpop.eup %1281 }
 0x4a7   :  { %v1284_v18 = vpop.eup %1283  ;;  %895 = vadd.xlane.f32.xlu1 %v1282_v15 }
 0x4a8   :  { %901 = vadd.xlane.f32.xlu0 %v1284_v18 }
 0x4a9   :  { %v1286_v19 = vpop.eup %1285 }
 0x4ab   :  { %v1288_v61 = vpop.eup %1287  ;;  %903 = vadd.xlane.f32.xlu1 %v1286_v19 }
 0x4ac   :  { %905 = vadd.xlane.f32.xlu0 %v1288_v61 }
 0x4ad   :  { %v1290_v20 = vpop.eup %1289 }
 0x4af   :  { %907 = vadd.xlane.f32.xlu1 %v1290_v20 }
 0x51c   :  { %v882_v62 = vpop.xlane.xlu0 %881 }
 0x51d   :  { %1291 = vlog2.f32 %v882_v62 }
 0x520   :  { %v884_v22 = vpop.xlane.xlu1 %883  ;;  %v878_v0 = vpop.xlane.xlu0 %877 }
 0x521   :  { %1293 = vlog2.f32 %v884_v22 }
 0x522   :  { %1295 = vlog2.f32 %v878_v0 }
 0x524   :  { %v880_v1 = vpop.xlane.xlu1 %879 }
 0x525   :  { %1297 = vlog2.f32 %v880_v1  ;;  %v890_v2 = vpop.xlane.xlu0 %889 }
 0x526   :  { %1299 = vlog2.f32 %v890_v2 }
 0x527   :  { %v1292_v4 = vpop.eup %1291 }
 0x528   :  { %v914_v6 = vmul.f32 0.6931472, %v1292_v4  ;;  %v892_v7 = vpop.xlane.xlu1 %891 }
 0x529   :  { %1301 = vlog2.f32 %v892_v7  ;;  %v886_v8 = vpop.xlane.xlu0 %885 }
 0x52a   :  { %v943_v10 = vsub.f32 %v1646_v21, %v914_v6  ;;  %1303 = vlog2.f32 %v886_v8 }
 0x52b   :  { %v1294_v12 = vpop.eup %1293 }
 0x52c   :  { %v1296_v13 = vpop.eup %1295  ;;  %959 = vst [vmem:[#allocation10 + $0x10] sm:$0xff] %v943_v10  ;;  %v916_v16 = vmul.f32 0.6931472, %v1294_v12  ;;  %v888_v23 = vpop.xlane.xlu1 %887 }
 0x52d   :  { %v910_v24 = vmul.f32 0.6931472, %v1296_v13  ;;  %1305 = vlog2.f32 %v888_v23  ;;  %v898_v26 = vpop.xlane.xlu0 %897 }
 0x52e   :  { %v944_v27 = vsub.f32 %v1652_v3, %v916_v16  ;;  %1307 = vlog2.f32 %v898_v26 }
 0x52f   :  { %v1298_v28 = vpop.eup %1297  ;;  %v941_v29 = vsub.f32 %v1648_v63, %v910_v24 }
 0x530   :  { %v1300_v31 = vpop.eup %1299  ;;  %960 = vst [vmem:[#allocation10 + $0x18] sm:$0xff] %v944_v27  ;;  %v912_v32 = vmul.f32 0.6931472, %v1298_v28  ;;  %v900_v34 = vpop.xlane.xlu1 %899 }
 0x531   :  { %957 = vst [vmem:[#allocation10] sm:$0xff] %v941_v29  ;;  %v922_v21 = vmul.f32 0.6931472, %v1300_v31  ;;  %1309 = vlog2.f32 %v900_v34  ;;  %v894_v35 = vpop.xlane.xlu0 %893 }
 0x532   :  { %v942_v36 = vsub.f32 %v1654_v5, %v912_v32  ;;  %1311 = vlog2.f32 %v894_v35 }
 0x533   :  { %v1302_v38 = vpop.eup %1301  ;;  %v947_v39 = vsub.f32 %v1658_v9, %v922_v21 }
 0x534   :  { %v1304_v41 = vpop.eup %1303  ;;  %958 = vst [vmem:[#allocation10 + $0x8] sm:$0xff] %v942_v36  ;;  %v924_v3 = vmul.f32 0.6931472, %v1302_v38  ;;  %v896_v42 = vpop.xlane.xlu1 %895 }
 0x535   :  { %963 = vst [vmem:[#allocation10 + $0x30] sm:$0xff] %v947_v39  ;;  %v918_v63 = vmul.f32 0.6931472, %v1304_v41  ;;  %1313 = vlog2.f32 %v896_v42  ;;  %v902_v43 = vpop.xlane.xlu0 %901 }
 0x536   :  { %v948_v44 = vsub.f32 %v1660_v11, %v924_v3  ;;  %1315 = vlog2.f32 %v902_v43 }
 0x537   :  { %v1306_v46 = vpop.eup %1305  ;;  %v945_v47 = vsub.f32 %v1664_v17, %v918_v63 }
 0x538   :  { %v1308_v48 = vpop.eup %1307  ;;  %964 = vst [vmem:[#allocation10 + $0x38] sm:$0xff] %v948_v44  ;;  %v920_v5 = vmul.f32 0.6931472, %v1306_v46  ;;  %v904_v49 = vpop.xlane.xlu1 %903 }
 0x539   :  { %961 = vst [vmem:[#allocation10 + $0x20] sm:$0xff] %v945_v47  ;;  %v930_v9 = vmul.f32 0.6931472, %v1308_v48  ;;  %1317 = vlog2.f32 %v904_v49  ;;  %v906_v51 = vpop.xlane.xlu0 %905 }
 0x53a   :  { %v946_v52 = vsub.f32 %v1666_v25, %v920_v5  ;;  %1319 = vlog2.f32 %v906_v51 }
 0x53b   :  { %v1310_v54 = vpop.eup %1309  ;;  %v951_v55 = vsub.f32 %v1670_v30, %v930_v9 }
 0x53c   :  { %v1312_v56 = vpop.eup %1311  ;;  %962 = vst [vmem:[#allocation10 + $0x28] sm:$0xff] %v946_v52  ;;  %v932_v11 = vmul.f32 0.6931472, %v1310_v54  ;;  %v908_v57 = vpop.xlane.xlu1 %907 }
 0x53d   :  { %967 = vst [vmem:[#allocation10 + $0x50] sm:$0xff] %v951_v55  ;;  %v926_v17 = vmul.f32 0.6931472, %v1312_v56  ;;  %1321 = vlog2.f32 %v908_v57 }
 0x53e   :  { %v952_v59 = vsub.f32 %v1672_v33, %v932_v11 }
 0x53f   :  { %v1314_v14 = vpop.eup %1313  ;;  %v949_v60 = vsub.f32 %v1677_v37, %v926_v17 }
 0x540   :  { %v1316_v15 = vpop.eup %1315  ;;  %968 = vst [vmem:[#allocation10 + $0x58] sm:$0xff] %v952_v59  ;;  %v928_v18 = vmul.f32 0.6931472, %v1314_v14 }
 0x541   :  { %965 = vst [vmem:[#allocation10 + $0x40] sm:$0xff] %v949_v60  ;;  %v934_v25 = vmul.f32 0.6931472, %v1316_v15 }
 0x542   :  { %v950_v19 = vsub.f32 %v1680_v40, %v928_v18 }
 0x543   :  { %v1318_v30 = vpop.eup %1317  ;;  %v953_v61 = vsub.f32 %v1685_v45, %v934_v25 }
 0x544   :  { %v1320_v20 = vpop.eup %1319  ;;  %966 = vst [vmem:[#allocation10 + $0x48] sm:$0xff] %v950_v19  ;;  %v936_v62 = vmul.f32 0.6931472, %v1318_v30 }
 0x545   :  { %969 = vst [vmem:[#allocation10 + $0x60] sm:$0xff] %v953_v61  ;;  %v938_v22 = vmul.f32 0.6931472, %v1320_v20 }
 0x546   :  { %v954_v33 = vsub.f32 %v1689_v50, %v936_v62 }
 0x547   :  { %v1322_v0 = vpop.eup %1321  ;;  %v955_v37 = vsub.f32 %v1693_v53, %v938_v22 }
 0x548   :  { %970 = vst [vmem:[#allocation10 + $0x68] sm:$0xff] %v954_v33  ;;  %v940_v1 = vmul.f32 0.6931472, %v1322_v0 }
 0x549   :  { %971 = vst [vmem:[#allocation10 + $0x70] sm:$0xff] %v955_v37 }
 0x54a   :  { %v956_v40 = vsub.f32 %v1697_v58, %v940_v1 }
 0x54c   :  { %972 = vst [vmem:[#allocation10 + $0x78] sm:$0xff] %v956_v40 }
 0x54d   :  { %1422 = shalt.err (!%p1419_p8)
}
 0x54e   :  { %s1423_s26 = scalar_lea.hbm %s1734_s6, 2048 }
 0x54f   :  { %p1424_p9 = scmp.ne.s32.totalorder %s1734_s6, %s1423_s26  ;;  %p1427_p10 = scmp.lt.u32.totalorder %s1423_s26, %s1734_s6 }
 0x551   :  { %p1429_p11 = pnand %p1427_p10, %p1424_p9 }
 0x553   :  { %1432 = shalt.err (!%p1429_p11)
}
 0x554   :  { %s1448_s7 = smov 128   ;;  %s1449_s8 = smov 8  }
 0x555   :  { %984 = dma.vmem_to_hbm [thread:$0]  %s979_s21, 2048, %s1734_s6, [#allocation4], %s1448_s7, %s1448_s7, %s1449_s8  }
 0x556   :  { %1439 = dma.done.wait [#allocation4], 2048  }
 0x557   :  { %1440 = vsyncadd [#allocation4], 4294965248 }
 0x558   :  { %988 = vsyncpa [#allocation3], 1 }
 0x559   :  { %989 = vsyncpa [#allocation6], 1 }
 0x55a   :  { %990 = vsyncpa [#allocation9], 1 }
 0x55b   :  { %991 = vsyncpa [#allocation4], 1 }

</bundles_post_ra>
